<compile_context>
chip_gen: v7x
topology: tpu7x:2x2x1
jax: 0.10.0
libtpu: 0.0.40
codegen_flags: <defaults>
</compile_context>

<pallas_src>
import functools

import jax
import jax.numpy as jnp
from jax.experimental import pallas as pl
from jax.experimental.pallas import tpu as pltpu


# ----------------------------- VMEM / tiling policy -----------------------------

def _vmem_policy():
    """Generation-aware (limit, pipeline-block budget) in bytes."""
    try:
        cap = pltpu.get_tpu_info().vmem_capacity_bytes
    except Exception:
        cap = 64 * 1024 * 1024                     # conservative default (v7x-sized)
    if cap >= 128 * 1024 * 1024:                   # v5e / v6e
        limit = 100 * 1024 * 1024
        budget = 90 * 1024 * 1024
    else:                                          # v7x (64 MiB) or unknown
        limit = min(48 * 1024 * 1024, (cap * 3) // 4)
        budget = (limit * 3) // 4
    return limit, budget


def _min_sublane(dtype):
    """Minimum second-to-last block-dim multiple: 8 (f32), 16 (bf16), 32 (int8/fp8)."""
    return max(8, 32 // max(dtype.itemsize, 1))


def _divisors(n):
    return [d for d in range(1, n + 1) if n % d == 0]


def _channel_tile_candidates(c2, min_sub):
    # Valid second-to-last tiles: divisors of c2 that are multiples of min_sub, or the
    # full extent c2 (a full-dim block is exempt from the sublane-multiple rule).
    cands = {c2}
    cands.update(d for d in _divisors(c2) if d % min_sub == 0)
    return sorted(cands)


def _tier(steps):
    # Prefer >=4 grid steps (DMA/compute overlap + both v7x TensorCores), then >=2.
    return 2 if steps >= 4 else (1 if steps >= 2 else 0)


def _pick_fused_channel_tile(n, c2, hw, itemsize, budget, min_sub):
    """Channel tile for the fused train kernel (whole batch resident per grid step).

    Returns None if no legal tile fits the budget (caller falls back to two passes).
    """
    best = None
    for ct in _channel_tile_candidates(c2, min_sub):
        elems = n * ct * hw
        # in + out double-buffered, plus f32 intermediates (cast / centered copy).
        need = 4 * elems * itemsize + 2 * elems * 4
        if need > budget:
            continue
        key = (_tier(c2 // ct), elems)
        if best is None or key > best[0]:
            best = (key, ct)
    return None if best is None else best[1]


def _pick_ew_tiles(n, c2, hw, itemsize, budget, min_sub):
    """(nt, ct) for the elementwise / reduce kernels: MiB-scale blocks, >=4 steps preferred."""
    best = None
    for ct in _channel_tile_candidates(c2, min_sub):
        for nt in _divisors(n):
            elems = nt * ct * hw
            need = 4 * elems * itemsize + 2 * elems * 4
            if need > budget:
                continue
            steps = (n // nt) * (c2 // ct)
            key = (_tier(steps), elems * itemsize)
            if best is None or key > best[0]:
                best = (key, (nt, ct))
    if best is None:
        # TODO(synk): even a (1, min_sub, HW) block exceeds VMEM; would need to also tile
        # the H*W axis with a masked tail. Fall back to the smallest legal tile.
        ct = min_sub if (c2 >= min_sub and c2 % min_sub == 0) else c2
        return 1, ct
    return best[1]


def _ew_dtype(dtype):
    """FMA dtype for the normalize phase: keep bf16/f32 native, widen everything else."""
    if dtype == jnp.float32 or dtype == jnp.bfloat16:
        return dtype
    return jnp.float32


# ----------------------------------- kernels -----------------------------------

def _bn_fused_train_kernel(x_ref, gamma_ref, beta_ref, o_ref, mean_ref, var_ref,
                           *, inv_count, eps):
    # x_ref: (N, ct, HW) block holding the full batch + spatial extent for ct channels.
    x = x_ref[...].astype(jnp.float32)

    # Per-channel mean, then a *centered* variance (both passes are VMEM-resident, so the
    # two-pass formulation avoids E[x^2]-E[x]^2 cancellation at no HBM cost).
    s = jnp.sum(jnp.sum(x, axis=0, keepdims=True), axis=2, keepdims=True)      # (1,ct,1)
    mean = s * inv_count
    xc = x - mean
    s2 = jnp.sum(jnp.sum(xc * xc, axis=0, keepdims=True), axis=2, keepdims=True)
    var = s2 * inv_count                                                        # biased
    inv_std = jax.lax.rsqrt(var + eps)

    gamma = gamma_ref[...][None]                                                # (1,ct,1)
    beta = beta_ref[...][None]
    scale = inv_std * gamma
    shift = beta - mean * scale

    # Normalize: re-read x_ref and do the FMA in the I/O dtype (bf16 VALU on v6e/v7x).
    cdt = _ew_dtype(o_ref.dtype)
    o_ref[...] = (x_ref[...].astype(cdt) * scale.astype(cdt)
                  + shift.astype(cdt)).astype(o_ref.dtype)

    mean_ref[...] = mean[0]                                                     # (ct, 1)
    var_ref[...] = var[0]


def _bn_reduce_kernel(x_ref, mean_ref, var_ref, s_ref, s2_ref, sh_ref, *, inv_count):
    # Two-pass fallback, pass 1: per-channel shifted sum / sum-of-squares over the batch
    # grid axis (last, "arbitrary"); stats finalized on the last batch step.
    n = pl.program_id(1)
    x = x_ref[...].astype(jnp.float32)                                          # (nt,ct,HW)

    @pl.when(n == 0)
    def _():
        # Shift = per-channel mean of the first batch tile; conditions the single-pass
        # variance (sum-of-squares taken about ~mean instead of about 0).
        blk_inv = 1.0 / float(x.shape[0] * x.shape[2])
        sh = jnp.sum(jnp.sum(x, axis=0, keepdims=True), axis=2, keepdims=True) * blk_inv
        sh_ref[...] = sh[0]
        s_ref[...] = jnp.zeros_like(s_ref)
        s2_ref[...] = jnp.zeros_like(s2_ref)

    shift = sh_ref[...][None]                                                   # (1,ct,1)
    xc = x - shift
    s_ref[...] += jnp.sum(jnp.sum(xc, axis=0, keepdims=True),
                          axis=2, keepdims=True)[0]
    s2_ref[...] += jnp.sum(jnp.sum(xc * xc, axis=0, keepdims=True),
                           axis=2, keepdims=True)[0]

    @pl.when(n == pl.num_programs(1) - 1)
    def _():
        m_c = s_ref[...] * inv_count                       # mean of the shifted data
        var = jnp.maximum(s2_ref[...] * inv_count - m_c * m_c, 0.0)
        mean_ref[...] = sh_ref[...] + m_c
        var_ref[...] = var


def _bn_scale_shift_kernel(x_ref, scale_ref, shift_ref, o_ref):
    # Pure elementwise: out = x * scale[c] + shift[c]  (stats folded outside the kernel).
    cdt = _ew_dtype(o_ref.dtype)
    scale = scale_ref[...][None].astype(cdt)                                    # (1,ct,1)
    shift = shift_ref[...][None].astype(cdt)
    o_ref[...] = (x_ref[...].astype(cdt) * scale + shift).astype(o_ref.dtype)


# ---------------------------------- wrappers ------------------------------------

def _cat_param(params, name, c2):
    return jnp.concatenate([params["bn_r"][name], params["bn_i"][name]]).reshape(c2, 1)


def _apply_scale_shift(xf, scale, shift, limit, budget, min_sub):
    """Elementwise y = x * scale[c] + shift[c] over a (N, C2, HW) array."""
    N, C2, HW = xf.shape
    nt, ct = _pick_ew_tiles(N, C2, HW, xf.dtype.itemsize, budget, min_sub)
    return pl.pallas_call(
        _bn_scale_shift_kernel,
        out_shape=jax.ShapeDtypeStruct((N, C2, HW), xf.dtype),
        grid=(N // nt, C2 // ct),
        in_specs=[
            pl.BlockSpec((nt, ct, HW), lambda n, c: (n, c, 0)),
            pl.BlockSpec((ct, 1), lambda n, c: (c, 0)),
            pl.BlockSpec((ct, 1), lambda n, c: (c, 0)),
        ],
        out_specs=pl.BlockSpec((nt, ct, HW), lambda n, c: (n, c, 0)),
        compiler_params=pltpu.CompilerParams(
            dimension_semantics=("parallel", "parallel"),
            vmem_limit_bytes=limit),
    )(xf, scale, shift)


def complex_batchnorm2d_train(x, params, *, momentum=0.1, eps=1e-5,
                              _force_two_pass=False):
    """Training-mode forward (batch statistics). Returns (out, updated_running_stats)."""
    N, C2, H, W = x.shape
    assert C2 % 2 == 0, "channel dim must hold real+imag halves"
    C = C2 // 2
    HW = H * W
    xf = x.reshape(N, C2, HW)                       # free view; no padding / slicing

    gamma = _cat_param(params, "gamma", C2)
    beta = _cat_param(params, "beta", C2)

    limit, budget = _vmem_policy()
    min_sub = _min_sublane(x.dtype)
    count = N * HW
    inv_count = 1.0 / float(count)

    ct_fused = None if _force_two_pass else _pick_fused_channel_tile(
        N, C2, HW, x.dtype.itemsize, budget, min_sub)

    if ct_fused is not None:
        # Single HBM pass: read x once, write out once, stats on the fly.
        # TODO(synk): when C2 < 2*min_sub the channel grid collapses to 1 step; on v7x a
        # large tensor would then prefer the two-pass path to use both TensorCores.
        kernel = functools.partial(_bn_fused_train_kernel, inv_count=inv_count, eps=eps)
        out_f, bmean, bvar = pl.pallas_call(
            kernel,
            out_shape=(
                jax.ShapeDtypeStruct((N, C2, HW), x.dtype),
                jax.ShapeDtypeStruct((C2, 1), jnp.float32),
                jax.ShapeDtypeStruct((C2, 1), jnp.float32),
            ),
            grid=(C2 // ct_fused,),
            in_specs=[
                pl.BlockSpec((N, ct_fused, HW), lambda c: (0, c, 0)),
                pl.BlockSpec((ct_fused, 1), lambda c: (c, 0)),
                pl.BlockSpec((ct_fused, 1), lambda c: (c, 0)),
            ],
            out_specs=(
                pl.BlockSpec((N, ct_fused, HW), lambda c: (0, c, 0)),
                pl.BlockSpec((ct_fused, 1), lambda c: (c, 0)),
                pl.BlockSpec((ct_fused, 1), lambda c: (c, 0)),
            ),
            compiler_params=pltpu.CompilerParams(
                dimension_semantics=("parallel",),
                vmem_limit_bytes=limit),
        )(xf, gamma, beta)
    else:
        # Two-pass fallback (3 HBM passes): per-channel reduce, then elementwise normalize.
        nt, ct = _pick_ew_tiles(N, C2, HW, x.dtype.itemsize, budget, min_sub)
        kernel = functools.partial(_bn_reduce_kernel, inv_count=inv_count)
        bmean, bvar = pl.pallas_call(
            kernel,
            out_shape=(
                jax.ShapeDtypeStruct((C2, 1), jnp.float32),
                jax.ShapeDtypeStruct((C2, 1), jnp.float32),
            ),
            grid=(C2 // ct, N // nt),
            in_specs=[pl.BlockSpec((nt, ct, HW), lambda c, n: (n, c, 0))],
            out_specs=(
                pl.BlockSpec((ct, 1), lambda c, n: (c, 0)),
                pl.BlockSpec((ct, 1), lambda c, n: (c, 0)),
            ),
            scratch_shapes=[pltpu.VMEM((ct, 1), jnp.float32)] * 3,
            compiler_params=pltpu.CompilerParams(
                dimension_semantics=("parallel", "arbitrary"),
                vmem_limit_bytes=limit),
        )(xf)
        inv_std = jax.lax.rsqrt(bvar + eps)
        scale = gamma * inv_std
        shift = beta - bmean * scale
        out_f = _apply_scale_shift(xf, scale, shift, limit, budget, min_sub)

    out = out_f.reshape(N, C2, H, W)

    # PyTorch running-stat update: running_mean <- batch mean, running_var <- *unbiased* var.
    bmean = bmean[:, 0]
    bvar_unbiased = bvar[:, 0] * (count / max(count - 1, 1))
    new_stats = {}
    for name, sl in (("bn_r", slice(0, C)), ("bn_i", slice(C, C2))):
        new_stats[name] = {
            "running_mean": (1.0 - momentum) * params[name]["running_mean"]
                            + momentum * bmean[sl],
            "running_var": (1.0 - momentum) * params[name]["running_var"]
                           + momentum * bvar_unbiased[sl],
        }
    return out, new_stats


def complex_batchnorm2d_eval(x, params, *, eps=1e-5):
    """Eval-mode forward (running statistics), folded into per-channel scale/shift."""
    N, C2, H, W = x.shape
    assert C2 % 2 == 0
    HW = H * W
    xf = x.reshape(N, C2, HW)

    gamma = _cat_param(params, "gamma", C2)
    beta = _cat_param(params, "beta", C2)
    rmean = _cat_param(params, "running_mean", C2)
    rvar = _cat_param(params, "running_var", C2)
    scale = gamma * jax.lax.rsqrt(rvar + eps)              # (2C, 1) folded on host
    shift = beta - rmean * scale

    limit, budget = _vmem_policy()
    min_sub = _min_sublane(x.dtype)
    out_f = _apply_scale_shift(xf, scale, shift, limit, budget, min_sub)
    return out_f.reshape(N, C2, H, W)


# ----------------------------- reference & test -----------------------------

def init_params(key, num_features):
    ks = jax.random.split(key, 8)

    def bn(k0, k1, k2, k3):
        return {
            "gamma": 1.0 + 0.1 * jax.random.normal(k0, (num_features,), jnp.float32),
            "beta": 0.1 * jax.random.normal(k1, (num_features,), jnp.float32),
            "running_mean": 0.1 * jax.random.normal(k2, (num_features,), jnp.float32),
            "running_var": jnp.abs(1.0 + 0.1 * jax.random.normal(k3, (num_features,),
                                                                 jnp.float32)),
        }

    return {"bn_r": bn(*ks[:4]), "bn_i": bn(*ks[4:])}


def reference(x, params, training, eps=1e-5):
    """Pure-JAX reference of NaiveComplexBatchNorm2d.forward."""
    N, C2, H, W = x.shape
    C = C2 // 2
    halves = []
    for name, xr in (("bn_r", x[:, :C]), ("bn_i", x[:, C:])):
        p = params[name]
        if training:
            mean = jnp.mean(xr, axis=(0, 2, 3))
            var = jnp.var(xr, axis=(0, 2, 3))
        else:
            mean = p["running_mean"]
            var = p["running_var"]
        y = (xr - mean[None, :, None, None]) * jax.lax.rsqrt(var + eps)[None, :, None, None]
        y = y * p["gamma"][None, :, None, None] + p["beta"][None, :, None, None]
        halves.append(y)
    return jnp.concatenate(halves, axis=1)


if __name__ == "__main__":
    key = jax.random.PRNGKey(0)
    kx, kp = jax.random.split(key)

    N, C, H, W = 2, 4, 16, 16                  # input carries 2*C = 8 channels (real+imag)
    x = jax.random.normal(kx, (N, 2 * C, H, W), jnp.float32)
    params = init_params(kp, C)

    # Training-mode forward (PyTorch default), fused single-pass path.
    out_tr, new_stats = complex_batchnorm2d_train(x, params)
    out_tr = jax.block_until_ready(out_tr)
    ref_tr = reference(x, params, training=True)
    assert out_tr.shape == x.shape
    assert jnp.allclose(out_tr, ref_tr, atol=1e-4, rtol=1e-4), "train-mode mismatch"

    # Running-stat update check (bn_r running_mean).
    bm_r = jnp.mean(x[:, :C], axis=(0, 2, 3))
    exp_rm = 0.9 * params["bn_r"]["running_mean"] + 0.1 * bm_r
    assert jnp.allclose(new_stats["bn_r"]["running_mean"], exp_rm, atol=1e-5, rtol=1e-5), \
        "running-mean update mismatch"

    # Training-mode forward via the two-pass fallback (reduce + elementwise) path.
    out_tp, _ = complex_batchnorm2d_train(x, params, _force_two_pass=True)
    out_tp = jax.block_until_ready(out_tp)
    assert jnp.allclose(out_tp, ref_tr, atol=1e-4, rtol=1e-4), "two-pass fallback mismatch"

    # Eval-mode forward (running stats folded into scale/shift).
    out_ev = jax.block_until_ready(complex_batchnorm2d_eval(x, params))
    ref_ev = reference(x, params, training=False)
    assert jnp.allclose(out_ev, ref_ev, atol=1e-5, rtol=1e-5), "eval-mode mismatch"

    print("KERNEL_OK")
</pallas_src>

<mosaic_0001>
module attributes {stable_mosaic.version = 11 : i64} {
  func.func @_bn_fused_train_kernel(%arg0: i32, %arg1: memref<2x8x256xf32, #tpu.memory_space<vmem>>, %arg2: memref<8x1xf32, #tpu.memory_space<vmem>>, %arg3: memref<8x1xf32, #tpu.memory_space<vmem>>, %arg4: memref<2x8x256xf32, #tpu.memory_space<vmem>>, %arg5: memref<8x1xf32, #tpu.memory_space<vmem>>, %arg6: memref<8x1xf32, #tpu.memory_space<vmem>>) attributes {dimension_semantics = [#tpu.dimension_semantics<parallel>], iteration_bounds = array<i64: 1>, scalar_prefetch = 0 : i64, scratch_operands = 0 : i64, tpu.core_type = #tpu.core_type<tc>, window_params = [{transform_indices = @transform_0, window_bounds = array<i64: 2, 8, 256>}, {transform_indices = @transform_1, window_bounds = array<i64: 8, 1>}, {transform_indices = @transform_2, window_bounds = array<i64: 8, 1>}, {transform_indices = @transform_3, window_bounds = array<i64: 2, 8, 256>}, {transform_indices = @transform_4, window_bounds = array<i64: 8, 1>}, {transform_indices = @transform_5, window_bounds = array<i64: 8, 1>}]} {
    %c0 = arith.constant 0 : index
    %c0_0 = arith.constant 0 : index
    %c0_1 = arith.constant 0 : index
    %0 = vector.load %arg1[%c0, %c0_0, %c0_1] : memref<2x8x256xf32, #tpu.memory_space<vmem>>, vector<2x8x256xf32>
    %cst = arith.constant dense<0.000000e+00> : vector<8x256xf32>
    %1 = vector.multi_reduction <add>, %0, %cst [0] : vector<2x8x256xf32> to vector<8x256xf32>
    %2 = vector.shape_cast %1 : vector<8x256xf32> to vector<1x8x256xf32>
    %cst_2 = arith.constant dense<0.000000e+00> : vector<1x8xf32>
    %3 = vector.multi_reduction <add>, %2, %cst_2 [2] : vector<1x8x256xf32> to vector<1x8xf32>
    %4 = vector.shape_cast %3 : vector<1x8xf32> to vector<1x8x1xf32>
    %cst_3 = arith.constant 0.001953125 : f32
    %5 = vector.broadcast %cst_3 : f32 to vector<1x8x1xf32>
    %6 = arith.mulf %4, %5 : vector<1x8x1xf32>
    %7 = vector.broadcast %6 : vector<1x8x1xf32> to vector<2x8x256xf32>
    %8 = arith.subf %0, %7 : vector<2x8x256xf32>
    %9 = arith.mulf %8, %8 : vector<2x8x256xf32>
    %cst_4 = arith.constant dense<0.000000e+00> : vector<8x256xf32>
    %10 = vector.multi_reduction <add>, %9, %cst_4 [0] : vector<2x8x256xf32> to vector<8x256xf32>
    %11 = vector.shape_cast %10 : vector<8x256xf32> to vector<1x8x256xf32>
    %cst_5 = arith.constant dense<0.000000e+00> : vector<1x8xf32>
    %12 = vector.multi_reduction <add>, %11, %cst_5 [2] : vector<1x8x256xf32> to vector<1x8xf32>
    %13 = vector.shape_cast %12 : vector<1x8xf32> to vector<1x8x1xf32>
    %cst_6 = arith.constant 0.001953125 : f32
    %14 = vector.broadcast %cst_6 : f32 to vector<1x8x1xf32>
    %15 = arith.mulf %13, %14 : vector<1x8x1xf32>
    %cst_7 = arith.constant 9.99999974E-6 : f32
    %16 = vector.broadcast %cst_7 : f32 to vector<1x8x1xf32>
    %17 = arith.addf %15, %16 : vector<1x8x1xf32>
    %18 = math.rsqrt %17 : vector<1x8x1xf32>
    %c0_8 = arith.constant 0 : index
    %c0_9 = arith.constant 0 : index
    %19 = vector.load %arg2[%c0_8, %c0_9] : memref<8x1xf32, #tpu.memory_space<vmem>>, vector<8x1xf32>
    %20 = vector.shape_cast %19 : vector<8x1xf32> to vector<1x8x1xf32>
    %c0_10 = arith.constant 0 : index
    %c0_11 = arith.constant 0 : index
    %21 = vector.load %arg3[%c0_10, %c0_11] : memref<8x1xf32, #tpu.memory_space<vmem>>, vector<8x1xf32>
    %22 = vector.shape_cast %21 : vector<8x1xf32> to vector<1x8x1xf32>
    %23 = arith.mulf %18, %20 : vector<1x8x1xf32>
    %24 = arith.mulf %6, %23 : vector<1x8x1xf32>
    %25 = arith.subf %22, %24 : vector<1x8x1xf32>
    %c0_12 = arith.constant 0 : index
    %c0_13 = arith.constant 0 : index
    %c0_14 = arith.constant 0 : index
    %26 = vector.load %arg1[%c0_12, %c0_13, %c0_14] : memref<2x8x256xf32, #tpu.memory_space<vmem>>, vector<2x8x256xf32>
    %27 = vector.broadcast %23 : vector<1x8x1xf32> to vector<2x8x256xf32>
    %28 = arith.mulf %26, %27 : vector<2x8x256xf32>
    %29 = vector.broadcast %25 : vector<1x8x1xf32> to vector<2x8x256xf32>
    %30 = arith.addf %28, %29 : vector<2x8x256xf32>
    %c0_15 = arith.constant 0 : index
    %c0_16 = arith.constant 0 : index
    %c0_17 = arith.constant 0 : index
    %31 = vector.load %arg4[%c0_15, %c0_16, %c0_17] : memref<2x8x256xf32, #tpu.memory_space<vmem>>, vector<2x8x256xf32>
    tpu.vector_store %arg4[%c0_15, %c0_16, %c0_17], %30 {strides = array<i32>} : memref<2x8x256xf32, #tpu.memory_space<vmem>>, vector<2x8x256xf32>,
    %32 = vector.shape_cast %6 : vector<1x8x1xf32> to vector<8x1xf32>
    %c0_18 = arith.constant 0 : index
    %c0_19 = arith.constant 0 : index
    %33 = vector.load %arg5[%c0_18, %c0_19] : memref<8x1xf32, #tpu.memory_space<vmem>>, vector<8x1xf32>
    tpu.vector_store %arg5[%c0_18, %c0_19], %32 {strides = array<i32>} : memref<8x1xf32, #tpu.memory_space<vmem>>, vector<8x1xf32>,
    %34 = vector.shape_cast %15 : vector<1x8x1xf32> to vector<8x1xf32>
    %c0_20 = arith.constant 0 : index
    %c0_21 = arith.constant 0 : index
    %35 = vector.load %arg6[%c0_20, %c0_21] : memref<8x1xf32, #tpu.memory_space<vmem>>, vector<8x1xf32>
    tpu.vector_store %arg6[%c0_20, %c0_21], %34 {strides = array<i32>} : memref<8x1xf32, #tpu.memory_space<vmem>>, vector<8x1xf32>,
    return
  }
  func.func @transform_0(%arg0: i32) -> (i32, i32, i32) {
    %c0_i32 = arith.constant 0 : i32
    %c0_i32_0 = arith.constant 0 : i32
    %c0_i32_1 = arith.constant 0 : i32
    return %c0_i32, %arg0, %c0_i32_0 : i32, i32, i32
  }
  func.func @transform_1(%arg0: i32) -> (i32, i32) {
    %c0_i32 = arith.constant 0 : i32
    %c0_i32_0 = arith.constant 0 : i32
    return %arg0, %c0_i32 : i32, i32
  }
  func.func @transform_2(%arg0: i32) -> (i32, i32) {
    %c0_i32 = arith.constant 0 : i32
    %c0_i32_0 = arith.constant 0 : i32
    return %arg0, %c0_i32 : i32, i32
  }
  func.func @transform_3(%arg0: i32) -> (i32, i32, i32) {
    %c0_i32 = arith.constant 0 : i32
    %c0_i32_0 = arith.constant 0 : i32
    %c0_i32_1 = arith.constant 0 : i32
    return %c0_i32, %arg0, %c0_i32_0 : i32, i32, i32
  }
  func.func @transform_4(%arg0: i32) -> (i32, i32) {
    %c0_i32 = arith.constant 0 : i32
    %c0_i32_0 = arith.constant 0 : i32
    return %arg0, %c0_i32 : i32, i32
  }
  func.func @transform_5(%arg0: i32) -> (i32, i32) {
    %c0_i32 = arith.constant 0 : i32
    %c0_i32_0 = arith.constant 0 : i32
    return %arg0, %c0_i32 : i32, i32
  }
}

</mosaic_0001>

<bundles_post_ra>
// kernel: tpu_custom_call.1
= control target key start
LH: loop header
LB: loop body
LE: loop exit
PB: predicated region body
PF: predicated region fallthrough
CT: control target
= control target key end

     0   :  { %11 = vsyncpa [#allocation3], 0  ;;  %s249_s0 = inlined_call_operand.hbm [shape: f32[2,8,256], index: 0, kind: input, shape index: {}]   ;;  %s250_s1 = inlined_call_operand.vmem [shape: f32[8,1], index: 1, kind: input, shape index: {}]   ;;  %s251_s2 = inlined_call_operand.vmem [shape: f32[8,1], index: 2, kind: input, shape index: {}]   ;;  %s252_s3 = inlined_call_operand.hbm [shape: f32[2,8,256], index: 3, kind: output, shape index: {0}]   ;;  %s253_s4 = inlined_call_operand.vmem [shape: f32[8,1], index: 4, kind: output, shape index: {1}]   ;;  %s254_s5 = inlined_call_operand.vmem [shape: f32[8,1], index: 5, kind: output, shape index: {2}]  }
   0x1   :  { %12 = vsyncpa [#allocation4], 0  ;;  %s170_s18 = smov [#allocation2]   ;;  %s122_s22 = scalar_lea.hbm %s249_s0, 512 }
   0x2   :  { %s18_s19 = sshll.u32 %s170_s18, 4  ;;  %p123_p0 = scmp.ne.s32.totalorder %s249_s0, %s122_s22  ;;  %s19_s19 = int_to_ptr.vmem [resolvable:$true] %s18_s19 }
   0x3   :  { %p126_p1 = scmp.lt.u32.totalorder %s122_s22, %s249_s0 }
   0x5   :  { %p128_p2 = pnand %p126_p1, %p123_p0 }
   0x7   :  { %131 = shalt.err (!%p128_p2)
}
   0x8   :  { %s132_s27 = scalar_lea.vmem %s19_s19, 512  ;;  %p137_p4 = scmp.lt.s32.totalorder %s19_s19, %s19_s19 }
   0x9   :  { %p133_p3 = scmp.ne.s32.totalorder %s19_s19, %s132_s27  ;;  %p138_p5 = scmp.lt.s32.totalorder %s132_s27, %s132_s27 }
   0xb   :  { %p139_p6 = por %p138_p5, %p137_p4 }
   0xd   :  { %p140_p7 = pnand %p139_p6, %p133_p3 }
   0xf   :  { %143 = shalt.err (!%p140_p7)
}
  0x10   :  { %s171_s28 = smov 256   ;;  %s172_s29 = smov 16  }
  0x11   :  { %24 = dma.hbm_to_vmem [thread:$0]  %s249_s0, 512, %s19_s19, [#allocation3], %s171_s28, %s171_s28, %s172_s29  }
  0x12   :  { %166 = dma.done.wait [#allocation3], 512  }
  0x13   :  { %167 = vsyncadd [#allocation3], 4294966784  ;;  %v32_v0 = vld [vmem:[#allocation2] sm:$0xff]  ;;  %v33_v1 = vld [vmem:[#allocation2 + $0x8] sm:$0xff]  ;;  %vm85_vm0 = vcmask 7168   ;;  %v173_v20 = vmov 0  }
  0x14   :  { %v34_v2 = vld [vmem:[#allocation2 + $0x10] sm:$0xff]  ;;  %v35_v3 = vld [vmem:[#allocation2 + $0x18] sm:$0xff]  ;;  %118 = vset.pattern.permute.xlu1 %v173_v20  ;;  %119 = vset.pattern.permute.xlu0 %v173_v20  ;;  %v58_v24 = vld [vmem:[%s250_s1] sm:$0xff]  ;;  %s174_s13 = smov [#allocation5]  }
  0x15   :  { %v36_v4 = vadd.f32 %v34_v2, %v32_v0  ;;  %v37_v5 = vadd.f32 %v35_v3, %v33_v1  ;;  %v59_v27 = vld [vmem:[%s251_s2] sm:$0xff]  ;;  %s93_s14 = sshll.u32 %s174_s13, 4  ;;  %s94_s14 = int_to_ptr.vmem [resolvable:$true] %s93_s14 }
  0x16   :  { %s144_s1 = scalar_lea.vmem %s94_s14, 512  ;;  %p149_p9 = scmp.lt.s32.totalorder %s94_s14, %s94_s14 }
  0x17   :  { %v38_v6 = vadd.f32 %v37_v5, %v36_v4  ;;  %p145_p8 = scmp.ne.s32.totalorder %s94_s14, %s144_s1  ;;  %p150_p10 = scmp.lt.s32.totalorder %s144_s1, %s144_s1 }
  0x19   :  { %39 = vadd.xlane.f32.xlu0 %v38_v6  ;;  %p151_p11 = por %p150_p10, %p149_p9 }
  0x1b   :  { %p152_p12 = pnand %p151_p11, %p145_p8 }
  0xa6   :  { %v40_v7 = vpop.xlane.xlu0 %39 }
  0xa7   :  { %v41_v8 = vmul.f32 0.001953125, %v40_v7 }
  0xa9   :  { %v42_v9 = vsub.f32 %v32_v0, %v41_v8  ;;  %v43_v10 = vsub.f32 %v33_v1, %v41_v8  ;;  %v44_v11 = vsub.f32 %v34_v2, %v41_v8  ;;  %v45_v12 = vsub.f32 %v35_v3, %v41_v8  ;;  %86 = vst.msk [vmem:[%s253_s4] sm:$0xff] %vm85_vm0, %v41_v8 }
  0xab   :  { %v46_v13 = vmul.f32 %v42_v9, %v42_v9  ;;  %v47_v14 = vmul.f32 %v43_v10, %v43_v10  ;;  %v48_v15 = vmul.f32 %v44_v11, %v44_v11  ;;  %v49_v16 = vmul.f32 %v45_v12, %v45_v12 }
  0xad   :  { %v50_v17 = vadd.f32 %v48_v15, %v46_v13  ;;  %v51_v18 = vadd.f32 %v49_v16, %v47_v14 }
  0xaf   :  { %v52_v19 = vadd.f32 %v51_v18, %v50_v17 }
  0xb1   :  { %53 = vadd.xlane.f32.xlu0 %v52_v19 }
 0x13e   :  { %v54_v21 = vpop.xlane.xlu0 %53 }
 0x13f   :  { %v55_v22 = vmul.f32 0.001953125, %v54_v21 }
 0x141   :  { %v56_v23 = vadd.f32 1e-05, %v55_v22  ;;  %87 = vst.msk [vmem:[%s254_s5] sm:$0xff] %vm85_vm0, %v55_v22 }
 0x143   :  { %120 = vrsqrt.f32 %v56_v23 }
 0x14d   :  { %v121_v25 = vpop.eup %120 }
 0x14e   :  { %v60_v26 = vmul.f32 %v121_v25, %v58_v24 }
 0x150   :  { %65 = vperm.xlu1 %118, %v60_v26   ;;  %v61_v28 = vmul.f32 %v60_v26, %v41_v8 }
 0x152   :  { %v62_v29 = vsub.f32 %v59_v27, %v61_v28 }
 0x154   :  { %74 = vperm.xlu1 %118, %v62_v29  }
 0x1cf   :  { %v66_v30 = vpop.permute.xlu1 %65 }
 0x1d0   :  { %v68_v31 = vmul.f32 %v66_v30, %v32_v0  ;;  %v69_v32 = vmul.f32 %v66_v30, %v33_v1  ;;  %v70_v33 = vmul.f32 %v66_v30, %v34_v2  ;;  %v71_v34 = vmul.f32 %v66_v30, %v35_v3 }
 0x1d3   :  { %v75_v35 = vpop.permute.xlu1 %74 }
 0x1d4   :  { %v77_v36 = vadd.f32 %v75_v35, %v68_v31  ;;  %v78_v37 = vadd.f32 %v75_v35, %v69_v32  ;;  %v79_v38 = vadd.f32 %v75_v35, %v70_v33  ;;  %v80_v39 = vadd.f32 %v75_v35, %v71_v34 }
 0x1d6   :  { %81 = vst [vmem:[#allocation5] sm:$0xff] %v77_v36  ;;  %82 = vst [vmem:[#allocation5 + $0x8] sm:$0xff] %v78_v37 }
 0x1d7   :  { %83 = vst [vmem:[#allocation5 + $0x10] sm:$0xff] %v79_v38  ;;  %84 = vst [vmem:[#allocation5 + $0x18] sm:$0xff] %v80_v39 }
 0x1d8   :  { %155 = shalt.err (!%p152_p12)
}
 0x1d9   :  { %s156_s15 = scalar_lea.hbm %s252_s3, 512 }
 0x1da   :  { %p157_p13 = scmp.ne.s32.totalorder %s252_s3, %s156_s15  ;;  %p160_p0 = scmp.lt.u32.totalorder %s156_s15, %s252_s3 }
 0x1dc   :  { %p162_p1 = pnand %p160_p0, %p157_p13 }
 0x1de   :  { %165 = shalt.err (!%p162_p1)
}
 0x1df   :  { %99 = dma.vmem_to_hbm [thread:$0]  %s94_s14, 512, %s252_s3, [#allocation4], %s171_s28, %s171_s28, %s172_s29  }
 0x1e0   :  { %168 = dma.done.wait [#allocation4], 512  }
 0x1e1   :  { %169 = vsyncadd [#allocation4], 4294966784 }
 0x1e2   :  { %111 = vsyncpa [#allocation3], 1 }
 0x1e3   :  { %112 = vsyncpa [#allocation4], 1 }

</bundles_post_ra>
